<compile_context>
chip_gen: v7x
topology: tpu7x:2x2x1
jax: 0.10.0
libtpu: 0.0.40
codegen_flags: <defaults>
</compile_context>

<pallas_src>
import jax
import jax.numpy as jnp
from jax import lax
from jax.experimental import pallas as pl
from jax.experimental.pallas import tpu as pltpu

# ---- small, module-consistent config ----------------------------------------
N = 2            # batch
L = 8            # sequence length
H = 32           # hidden_size
MAX_POS = 16     # max_position_embeddings
A_VOCAB = 30     # a_embedding vocab (padding_idx=0)
CHG_VOCAB = 10   # charge_embedding vocab (padding_idx=0)
PHOS_VOCAB = 10  # phos_embedding vocab
LN_EPS = 1e-12   # layer_norm_eps

# ---- fused-table layout ------------------------------------------------------
A_OFF = 0
PHOS_OFF = A_OFF + A_VOCAB              # 30
CHG_OFF = PHOS_OFF + PHOS_VOCAB         # 40
POS_OFF = CHG_OFF + CHG_VOCAB           # 50
K_TOTAL = POS_OFF + MAX_POS             # 66  (max id value is 65)
GAMMA_ROW = K_TOTAL                     # 66  (never selected by any one-hot)
BETA_ROW = K_TOTAL + 1                  # 67
K_PAD = 128                             # pad to one full MXU contraction
NL = N * L


def _acid_embeddings_kernel(ids_ref, tab_ref, out_ref):
    f32 = jnp.float32

    ids = ids_ref[...]                                          # (NL, 4) int32, offsets pre-added
    kk = lax.broadcasted_iota(jnp.int32, (NL, K_PAD), 1)        # column index 0..127

    # Combined multi-hot selector: the 4 offset ranges are disjoint, so OR of
    # the 4 one-hots == their sum.  4 compares + 3 ORs + 1 cast (all VPU).
    hot = ((ids[:, 0:1] == kk) | (ids[:, 1:2] == kk)
           | (ids[:, 2:3] == kk) | (ids[:, 3:4] == kk)).astype(f32)

    # Single MXU pass: (NL,128) x (128,H) -> sum of the four embeddings.
    emb = jnp.dot(hot, tab_ref[...], preferred_element_type=f32)

    # LayerNorm over the hidden dim (biased variance, eps inside rsqrt).
    mean = jnp.mean(emb, axis=-1, keepdims=True)
    cent = emb - mean
    var = jnp.mean(cent * cent, axis=-1, keepdims=True)
    normed = cent * lax.rsqrt(var + LN_EPS)                     # rsqrt -> EUP

    # gamma/beta live in the fused table; static slices are free views.
    gamma = tab_ref[GAMMA_ROW:GAMMA_ROW + 1, :]                 # (1, H)
    beta = tab_ref[BETA_ROW:BETA_ROW + 1, :]                    # (1, H)
    out = normed * gamma + beta

    # Dropout is identity in eval mode.
    out_ref[...] = out                                          # contiguous (NL, H) store


def acid_bert_embeddings(peptide_tokens, decoration, charge, fused_table):
    """Forward pass.  fused_table: (K_PAD, H) f32 with gamma/beta at rows 66/67."""
    tok = peptide_tokens.astype(jnp.int32).reshape(NL) + A_OFF
    dec = decoration.astype(jnp.int32).reshape(NL) + PHOS_OFF
    chg = jnp.broadcast_to(charge.astype(jnp.int32)[:, None], (N, L)).reshape(NL) + CHG_OFF
    pos = jnp.tile(jnp.arange(L, dtype=jnp.int32), N) + POS_OFF
    ids = jnp.stack([tok, dec, chg, pos], axis=1)               # (NL, 4) int32

    vmem = pl.BlockSpec(memory_space=pltpu.MemorySpace.VMEM)
    cost = pl.CostEstimate(
        flops=2 * NL * K_PAD * H + 8 * NL * H,                  # fused matmul + LN elementwise
        transcendentals=NL,                                     # one rsqrt per row
        bytes_accessed=ids.size * 4 + fused_table.size * 4 + NL * H * 4,
    )

    out2d = pl.pallas_call(
        _acid_embeddings_kernel,
        out_shape=jax.ShapeDtypeStruct((NL, H), jnp.float32),
        in_specs=[vmem, vmem],
        out_specs=vmem,
        cost_estimate=cost,
    )(ids, fused_table)

    # Metadata-only reshape in the wrapper (kernel keeps its natural 2-D slab).
    return out2d.reshape(N, L, H)


# jitted entry point
acid_bert_embeddings_jit = jax.jit(acid_bert_embeddings)


def init_params(key):
    k1, k2, k3, k4 = jax.random.split(key, 4)
    a_tab = jax.random.normal(k1, (A_VOCAB, H), jnp.float32)
    a_tab = a_tab.at[0].set(0.0)                 # padding_idx=0
    chg_tab = jax.random.normal(k2, (CHG_VOCAB, H), jnp.float32)
    chg_tab = chg_tab.at[0].set(0.0)             # padding_idx=0
    phos_tab = jax.random.normal(k3, (PHOS_VOCAB, H), jnp.float32)
    pos_tab = jax.random.normal(k4, (MAX_POS, H), jnp.float32)
    return {
        "a_embedding": a_tab,
        "charge_embedding": chg_tab,
        "phos_embedding": phos_tab,
        "position_embeddings": pos_tab,
        "ln_gamma": jnp.ones((H,), jnp.float32),
        "ln_beta": jnp.zeros((H,), jnp.float32),
    }


def build_fused(params):
    """One-time param prep: concatenate every embedding table AND gamma/beta
    into a single zero-padded (K_PAD, H) table (gamma row 66, beta row 67)."""
    table = jnp.zeros((K_PAD, H), jnp.float32)
    table = table.at[A_OFF:A_OFF + A_VOCAB].set(params["a_embedding"])
    table = table.at[PHOS_OFF:PHOS_OFF + PHOS_VOCAB].set(params["phos_embedding"])
    table = table.at[CHG_OFF:CHG_OFF + CHG_VOCAB].set(params["charge_embedding"])
    table = table.at[POS_OFF:POS_OFF + MAX_POS].set(params["position_embeddings"])
    table = table.at[GAMMA_ROW].set(params["ln_gamma"])
    table = table.at[BETA_ROW].set(params["ln_beta"])
    return table


def reference(peptide_tokens, decoration, charge, params):
    emb = (params["a_embedding"][peptide_tokens]
           + params["phos_embedding"][decoration]
           + params["charge_embedding"][charge][:, None, :]
           + params["position_embeddings"][jnp.arange(L)][None, :, :])
    mean = emb.mean(-1, keepdims=True)
    var = ((emb - mean) ** 2).mean(-1, keepdims=True)
    normed = (emb - mean) / jnp.sqrt(var + LN_EPS)
    return normed * params["ln_gamma"] + params["ln_beta"]


if __name__ == "__main__":
    key = jax.random.PRNGKey(0)
    kp, kd, kc, kw = jax.random.split(key, 4)

    peptide_tokens = jax.random.randint(kp, (N, L), 0, A_VOCAB, jnp.int32)
    decoration = jax.random.randint(kd, (N, L), 0, PHOS_VOCAB, jnp.int32)
    charge = jax.random.randint(kc, (N,), 0, CHG_VOCAB, jnp.int32)
    params = init_params(kw)
    fused_table = build_fused(params)

    out = acid_bert_embeddings_jit(peptide_tokens, decoration, charge, fused_table)
    out = jax.block_until_ready(out)

    ref = reference(peptide_tokens, decoration, charge, params)
    assert out.shape == (N, L, H)
    assert jnp.allclose(out, ref, atol=1e-4, rtol=1e-4), float(jnp.abs(out - ref).max())
    print("KERNEL_OK")
</pallas_src>

<mosaic_0001>
module attributes {stable_mosaic.version = 11 : i64} {
  func.func @_acid_embeddings_kernel(%arg0: memref<16x4xi32, #tpu.memory_space<vmem>>, %arg1: memref<128x32xf32, #tpu.memory_space<vmem>>, %arg2: memref<16x32xf32, #tpu.memory_space<vmem>>) attributes {dimension_semantics = [], scalar_prefetch = 0 : i64, scratch_operands = 0 : i64, tpu.core_type = #tpu.core_type<tc>} {
    %c0 = arith.constant 0 : index
    %c0_0 = arith.constant 0 : index
    %0 = vector.load %arg0[%c0, %c0_0] : memref<16x4xi32, #tpu.memory_space<vmem>>, vector<16x4xi32>
    %1 = tpu.iota {dimensions = array<i32: 1>} : vector<16x128xi32>
    %2 = vector.extract_strided_slice %0 {offsets = [0, 0], sizes = [16, 1], strides = [1, 1]} : vector<16x4xi32> to vector<16x1xi32>
    %3 = vector.broadcast %2 : vector<16x1xi32> to vector<16x128xi32>
    %4 = arith.cmpi eq, %3, %1 : vector<16x128xi32>
    %5 = vector.extract_strided_slice %0 {offsets = [0, 1], sizes = [16, 1], strides = [1, 1]} : vector<16x4xi32> to vector<16x1xi32>
    %6 = vector.broadcast %5 : vector<16x1xi32> to vector<16x128xi32>
    %7 = arith.cmpi eq, %6, %1 : vector<16x128xi32>
    %8 = arith.ori %4, %7 : vector<16x128xi1>
    %9 = vector.extract_strided_slice %0 {offsets = [0, 2], sizes = [16, 1], strides = [1, 1]} : vector<16x4xi32> to vector<16x1xi32>
    %10 = vector.broadcast %9 : vector<16x1xi32> to vector<16x128xi32>
    %11 = arith.cmpi eq, %10, %1 : vector<16x128xi32>
    %12 = arith.ori %8, %11 : vector<16x128xi1>
    %13 = vector.extract_strided_slice %0 {offsets = [0, 3], sizes = [16, 1], strides = [1, 1]} : vector<16x4xi32> to vector<16x1xi32>
    %14 = vector.broadcast %13 : vector<16x1xi32> to vector<16x128xi32>
    %15 = arith.cmpi eq, %14, %1 : vector<16x128xi32>
    %16 = arith.ori %12, %15 : vector<16x128xi1>
    %17 = arith.extui %16 : vector<16x128xi1> to vector<16x128xi32>
    %18 = arith.sitofp %17 : vector<16x128xi32> to vector<16x128xf32>
    %c0_1 = arith.constant 0 : index
    %c0_2 = arith.constant 0 : index
    %19 = vector.load %arg1[%c0_1, %c0_2] : memref<128x32xf32, #tpu.memory_space<vmem>>, vector<128x32xf32>
    %cst = arith.constant dense<0.000000e+00> : vector<16x32xf32>
    %20 = tpu.matmul %18, %19, %cst {dimension_numbers = #tpu.dot_dimension_numbers<[1], [0], [0], [1], [0, 0, 1, 1], [], []>} : vector<16x128xf32>, vector<128x32xf32>, vector<16x32xf32> -> vector<16x32xf32>
    %cst_3 = arith.constant dense<0.000000e+00> : vector<16xf32>
    %21 = vector.multi_reduction <add>, %20, %cst_3 [1] : vector<16x32xf32> to vector<16xf32>
    %22 = vector.shape_cast %21 : vector<16xf32> to vector<16x1xf32>
    %cst_4 = arith.constant 3.200000e+01 : f32
    %23 = vector.broadcast %cst_4 : f32 to vector<16x1xf32>
    %24 = arith.divf %22, %23 : vector<16x1xf32>
    %25 = vector.broadcast %24 : vector<16x1xf32> to vector<16x32xf32>
    %26 = arith.subf %20, %25 : vector<16x32xf32>
    %27 = arith.mulf %26, %26 : vector<16x32xf32>
    %cst_5 = arith.constant dense<0.000000e+00> : vector<16xf32>
    %28 = vector.multi_reduction <add>, %27, %cst_5 [1] : vector<16x32xf32> to vector<16xf32>
    %29 = vector.shape_cast %28 : vector<16xf32> to vector<16x1xf32>
    %cst_6 = arith.constant 3.200000e+01 : f32
    %30 = vector.broadcast %cst_6 : f32 to vector<16x1xf32>
    %31 = arith.divf %29, %30 : vector<16x1xf32>
    %cst_7 = arith.constant 9.99999996E-13 : f32
    %32 = vector.broadcast %cst_7 : f32 to vector<16x1xf32>
    %33 = arith.addf %31, %32 : vector<16x1xf32>
    %34 = math.rsqrt %33 : vector<16x1xf32>
    %35 = vector.broadcast %34 : vector<16x1xf32> to vector<16x32xf32>
    %36 = arith.mulf %26, %35 : vector<16x32xf32>
    %c66 = arith.constant 66 : index
    %c0_8 = arith.constant 0 : index
    %37 = vector.load %arg1[%c66, %c0_8] : memref<128x32xf32, #tpu.memory_space<vmem>>, vector<1x32xf32>
    %c67 = arith.constant 67 : index
    %c0_9 = arith.constant 0 : index
    %38 = vector.load %arg1[%c67, %c0_9] : memref<128x32xf32, #tpu.memory_space<vmem>>, vector<1x32xf32>
    %39 = vector.broadcast %37 : vector<1x32xf32> to vector<16x32xf32>
    %40 = arith.mulf %36, %39 : vector<16x32xf32>
    %41 = vector.broadcast %38 : vector<1x32xf32> to vector<16x32xf32>
    %42 = arith.addf %40, %41 : vector<16x32xf32>
    %c0_10 = arith.constant 0 : index
    %c0_11 = arith.constant 0 : index
    %43 = vector.load %arg2[%c0_10, %c0_11] : memref<16x32xf32, #tpu.memory_space<vmem>>, vector<16x32xf32>
    tpu.vector_store %arg2[%c0_10, %c0_11], %42 {strides = array<i32>} : memref<16x32xf32, #tpu.memory_space<vmem>>, vector<16x32xf32>,
    return
  }
}

</mosaic_0001>

<bundles_post_ra>
// kernel: acid_bert_embeddings.1
= control target key start
LH: loop header
LB: loop body
LE: loop exit
PB: predicated region body
PF: predicated region fallthrough
CT: control target
= control target key end

     0   :  { %v344_v2 = vmov 0   ;;  %s445_s0 = inlined_call_operand.vmem [shape: s32[16,4], index: 0, kind: input, shape index: {}]   ;;  %s446_s1 = inlined_call_operand.vmem [shape: f32[128,32], index: 1, kind: input, shape index: {}]   ;;  %s447_s2 = inlined_call_operand.hbm [shape: f32[16,32], index: 2, kind: output, shape index: {}]  }
   0x1   :  { %v13_v0 = vld [vmem:[%s445_s0 + $0x8] sm:$0xff]  ;;  %v12_v1 = vld [vmem:[%s445_s0] sm:$0xff]  ;;  %310 = vset.pattern.permute.xlu1 %v344_v2  ;;  %308 = vset.pattern.permute.xlu0 %v344_v2  ;;  %v60_v5 = vld [vmem:[%s446_s1 + $0x10] sm:$0xff] }
   0x2   :  { %v58_v3 = vld [vmem:[%s446_s1] sm:$0xff]  ;;  %v59_v4 = vld [vmem:[%s446_s1 + $0x8] sm:$0xff]  ;;  %20 = vperm.xlu1 %310, %v13_v0   ;;  %17 = vperm.xlu0 %308, %v12_v1   ;;  %v61_v7 = vld [vmem:[%s446_s1 + $0x18] sm:$0xff] }
   0x3   :  { %v268_v6 = vpack.c.bf16 %v59_v4, %v58_v3  ;;  %v62_v8 = vld [vmem:[%s446_s1 + $0x20] sm:$0xff]  ;;  %v63_v9 = vld [vmem:[%s446_s1 + $0x28] sm:$0xff] }
   0x4   :  { %7 = vsyncpa [#allocation3], 0  ;;  %v272_v10 = vpack.c.bf16 %v61_v7, %v60_v5  ;;  %v345_v11 = vmov 1   ;;  %v276_v12 = vpack.c.bf16 %v63_v9, %v62_v8  ;;  %v64_v13 = vld [vmem:[%s446_s1 + $0x30] sm:$0xff]  ;;  %v65_v14 = vld [vmem:[%s446_s1 + $0x38] sm:$0xff]  ;;  %v346_v16 = vmov 2  }
   0x5   :  { %269 = vmatprep.subr.bf16.mxu0 %v268_v6  ;;  %v280_v15 = vpack.c.bf16 %v65_v14, %v64_v13  ;;  %v66_v17 = vld [vmem:[%s446_s1 + $0x40] sm:$0xff]  ;;  %v67_v18 = vld [vmem:[%s446_s1 + $0x48] sm:$0xff]  ;;  %v68_v20 = vld [vmem:[%s446_s1 + $0x50] sm:$0xff]  ;;  %v347_v22 = vmov 3   ;;  %v14_v32 = vlaneseq  ;;  %v348_v39 = vmov 1.0   ;;  %s349_s0 = smov [#allocation2]  }
   0x6   :  { %271 = vmatpush3.bf16.msra.mxu0 %v268_v6  ;;  %311 = vset.pattern.permute.xlu1 %v345_v11  ;;  %v284_v19 = vpack.c.bf16 %v67_v18, %v66_v17  ;;  %v69_v21 = vld [vmem:[%s446_s1 + $0x58] sm:$0xff]  ;;  %v70_v24 = vld [vmem:[%s446_s1 + $0x60] sm:$0xff]  ;;  %v71_v25 = vld [vmem:[%s446_s1 + $0x68] sm:$0xff]  ;;  %vm149_vm14 = vcmask 261120   ;;  %s198_s20 = sshll.u32 %s349_s0, 4  ;;  %s199_s20 = int_to_ptr.vmem [resolvable:$true] %s198_s20 }
   0x7   :  { %309 = vset.pattern.permute.xlu0 %v345_v11  ;;  %28 = vperm.xlu1 %311, %v13_v0   ;;  %v288_v23 = vpack.c.bf16 %v69_v21, %v68_v20  ;;  %v292_v26 = vpack.c.bf16 %v71_v25, %v70_v24  ;;  %v72_v27 = vld [vmem:[%s446_s1 + $0x70] sm:$0xff]  ;;  %v73_v28 = vld [vmem:[%s446_s1 + $0x78] sm:$0xff]  ;;  %v15_v34 = vand.u32 127, %v14_v32  ;;  %v213_v62 = vld [vmem:[%s446_s1 + $0x42] ss:$0 sm:$0xff]  ;;  %s320_s21 = scalar_lea.vmem %s199_s20, 256  ;;  %p325_p1 = scmp.lt.s32.totalorder %s199_s20, %s199_s20 }
   0x8   :  { %25 = vperm.xlu0 %309, %v12_v1   ;;  %273 = vmatprep.subr.bf16.mxu0 %v272_v10  ;;  %v296_v29 = vpack.c.bf16 %v73_v28, %v72_v27  ;;  %p321_p0 = scmp.ne.s32.totalorder %s199_s20, %s320_s21  ;;  %p326_p2 = scmp.lt.s32.totalorder %s320_s21, %s320_s21 }
   0xa   :  { %275 = vmatpush3.bf16.msra.mxu0 %v272_v10  ;;  %p327_p3 = por %p326_p2, %p325_p1 }
   0xb   :  { %277 = vmatprep.subr.bf16.mxu0 %v276_v12  ;;  %312 = vset.pattern.permute.xlu1 %v346_v16 }
   0xc   :  { %313 = vset.pattern.permute.xlu0 %v346_v16  ;;  %35 = vperm.xlu1 %312, %v12_v1   ;;  %p328_p4 = pnand %p327_p3, %p321_p0 }
   0xd   :  { %38 = vperm.xlu0 %313, %v13_v0  }
   0xe   :  { %279 = vmatpush3.bf16.msra.mxu0 %v276_v12 }
   0xf   :  { %281 = vmatprep.subr.bf16.mxu0 %v280_v15 }
  0x10   :  { %314 = vset.pattern.permute.xlu1 %v347_v22 }
  0x11   :  { %315 = vset.pattern.permute.xlu0 %v347_v22  ;;  %45 = vperm.xlu1 %314, %v12_v1  }
  0x12   :  { %283 = vmatpush3.bf16.msra.mxu0 %v280_v15 }
  0x13   :  { %285 = vmatprep.subr.bf16.mxu0 %v284_v19 }
  0x15   :  { %48 = vperm.xlu1 %314, %v13_v0   ;;  %v214_v0 = vld [vmem:[%s446_s1 + $0x43] ss:$0 sm:$0xff] }
  0x16   :  { %287 = vmatpush3.bf16.msra.mxu0 %v284_v19 }
  0x17   :  { %289 = vmatprep.subr.bf16.mxu0 %v288_v23 }
  0x1a   :  { %291 = vmatpush3.bf16.msra.mxu0 %v288_v23 }
  0x1b   :  { %293 = vmatprep.subr.bf16.mxu0 %v292_v26 }
  0x1e   :  { %295 = vmatpush3.bf16.msra.mxu0 %v292_v26 }
  0x1f   :  { %297 = vmatprep.subr.bf16.mxu0 %v296_v29 }
  0x22   :  { %299 = vmatpush3.bf16.msra.mxu0 %v296_v29 }
  0x81   :  { %v21_v30 = vpop.permute.xlu1 %20  ;;  %v18_v31 = vpop.permute.xlu0 %17 }
  0x82   :  { %vm22_vm0 = vcmp.eq.s32.totalorder %v18_v31, %v15_v34  ;;  %vm23_vm9 = vcmp.eq.s32.totalorder %v21_v30, %v15_v34 }
  0x86   :  { %v29_v33 = vpop.permute.xlu1 %28 }
  0x87   :  { %v26_v35 = vpop.permute.xlu0 %25  ;;  %vm31_vm4 = vcmp.eq.s32.totalorder %v29_v33, %v15_v34 }
  0x88   :  { %vm30_vm1 = vcmp.eq.s32.totalorder %v26_v35, %v15_v34  ;;  %vm33_vm10 = vmor %vm23_vm9, %vm31_vm4 }
  0x89   :  { %vm32_vm2 = vmor %vm22_vm0, %vm30_vm1 }
  0x8b   :  { %v36_v36 = vpop.permute.xlu1 %35 }
  0x8c   :  { %vm40_vm3 = vcmp.eq.s32.totalorder %v36_v36, %v15_v34  ;;  %v39_v37 = vpop.permute.xlu0 %38 }
  0x8d   :  { %vm42_vm6 = vmor %vm32_vm2, %vm40_vm3  ;;  %vm41_vm7 = vcmp.eq.s32.totalorder %v39_v37, %v15_v34 }
  0x8e   :  { %vm43_vm11 = vmor %vm33_vm10, %vm41_vm7 }
  0x90   :  { %v46_v38 = vpop.permute.xlu1 %45 }
  0x91   :  { %vm50_vm5 = vcmp.eq.s32.totalorder %v46_v38, %v15_v34 }
  0x92   :  { %vm52_vm8 = vmor %vm42_vm6, %vm50_vm5 }
  0x93   :  { %265 = vmatprep.mubr.msk.f32.mxu0 %vm52_vm8, %v348_v39 }
  0x94   :  { %v49_v40 = vpop.permute.xlu1 %48 }
  0x95   :  { %vm51_vm12 = vcmp.eq.s32.totalorder %v49_v40, %v15_v34 }
  0x96   :  { %vm53_vm13 = vmor %vm43_vm11, %vm51_vm12 }
  0x97   :  { %266 = vmatmul.mubr.msk.f32.vlgmr.msra.gmra.mrb[0].mxu0 %vm53_vm13, %v348_v39 }
 0x16a   :  { %v267_v41 = vpop.f32.mrb[0].mxu0 }
 0x16b   :  { %v140_v42 = vpop.f32.mrb[1].mxu0  ;;  %v153_v43 = vsel %vm149_vm14, %v267_v41, 0.0 }
 0x16c   :  { %154 = vadd.xlane.f32.xlu1 %v153_v43  ;;  %v150_v44 = vsel %vm149_vm14, %v140_v42, 0.0 }
 0x16d   :  { %151 = vadd.xlane.f32.xlu0 %v150_v44 }
 0x1f9   :  { %v155_v45 = vpop.xlane.xlu1 %154 }
 0x1fa   :  { %v158_v46 = vmul.f32 0.03125, %v155_v45  ;;  %v152_v47 = vpop.xlane.xlu0 %151 }
 0x1fb   :  { %v157_v48 = vmul.f32 0.03125, %v152_v47 }
 0x1fc   :  { %v160_v49 = vsub.f32 %v267_v41, %v158_v46 }
 0x1fd   :  { %v159_v50 = vsub.f32 %v140_v42, %v157_v48 }
 0x1fe   :  { %v162_v53 = vmul.f32 %v160_v49, %v160_v49 }
 0x1ff   :  { %v161_v51 = vmul.f32 %v159_v50, %v159_v50 }
 0x200   :  { %v166_v54 = vsel %vm149_vm14, %v162_v53, 0.0 }
 0x201   :  { %v163_v52 = vsel %vm149_vm14, %v161_v51, 0.0 }
 0x202   :  { %164 = vadd.xlane.f32.xlu0 %v163_v52 }
 0x206   :  { %167 = vadd.xlane.f32.xlu0 %v166_v54 }
 0x28f   :  { %v165_v55 = vpop.xlane.xlu0 %164 }
 0x290   :  { %v169_v56 = vmul.f32 0.03125, %v165_v55 }
 0x292   :  { %v171_v57 = vadd.f32 1e-12, %v169_v56 }
 0x293   :  { %v168_v58 = vpop.xlane.xlu0 %167 }
 0x294   :  { %316 = vrsqrt.f32 %v171_v57  ;;  %v170_v59 = vmul.f32 0.03125, %v168_v58 }
 0x296   :  { %v172_v60 = vadd.f32 1e-12, %v170_v59 }
 0x298   :  { %318 = vrsqrt.f32 %v172_v60 }
 0x29e   :  { %v317_v61 = vpop.eup %316 }
 0x29f   :  { %v175_v63 = vmul.f32 %v317_v61, %v159_v50 }
 0x2a1   :  { %v183_v1 = vmul.f32 %v213_v62, %v175_v63 }
 0x2a2   :  { %v319_v2 = vpop.eup %318 }
 0x2a3   :  { %v176_v3 = vmul.f32 %v319_v2, %v160_v49  ;;  %v189_v4 = vadd.f32 %v214_v0, %v183_v1 }
 0x2a5   :  { %v184_v5 = vmul.f32 %v213_v62, %v176_v3  ;;  %191 = vst.msk [vmem:[#allocation2] sm:$0xff] %vm149_vm14, %v189_v4 }
 0x2a7   :  { %v190_v6 = vadd.f32 %v214_v0, %v184_v5 }
 0x2a9   :  { %192 = vst.msk [vmem:[#allocation2 + $0x8] sm:$0xff] %vm149_vm14, %v190_v6 }
 0x2aa   :  { %331 = shalt.err (!%p328_p4)
}
 0x2ab   :  { %s332_s23 = scalar_lea.hbm %s447_s2, 256 }
 0x2ac   :  { %p333_p5 = scmp.ne.s32.totalorder %s447_s2, %s332_s23  ;;  %p336_p6 = scmp.lt.u32.totalorder %s332_s23, %s447_s2 }
 0x2ae   :  { %p338_p7 = pnand %p336_p6, %p333_p5 }
 0x2b0   :  { %341 = shalt.err (!%p338_p7)
}
 0x2b1   :  { %s350_s28 = smov 128   ;;  %s351_s29 = smov 8  }
 0x2b2   :  { %204 = dma.vmem_to_hbm [thread:$0]  %s199_s20, 256, %s447_s2, [#allocation3], %s350_s28, %s350_s28, %s351_s29  }
 0x2b3   :  { %342 = dma.done.wait [#allocation3], 256  }
 0x2b4   :  { %343 = vsyncadd [#allocation3], 4294967040 }
 0x2b5   :  { %208 = vsyncpa [#allocation3], 1 }

</bundles_post_ra>
